<compile_context>
chip_gen: v6e
topology: v6e:2x2x1
jax: 0.10.0
libtpu: 0.0.40
codegen_flags: <defaults>
</compile_context>

<pallas_src>
import numpy as np
import jax
import jax.numpy as jnp
from jax.experimental import pallas as pl
from jax.experimental.pallas import tpu as pltpu

_LANES = 128


# ----------------------------------------------------------------------------
# Shared parameter prep (used by both the Pallas path and the jnp reference so
# the two are bit-identical; reciprocal is exact, not approx).
# ----------------------------------------------------------------------------
def _quant_params_rows(delta_rows, qp_rows, is_signed):
    sg = is_signed[0].astype(jnp.float32)
    delta = delta_rows.reshape(-1).astype(jnp.float32)      # (B,)
    qp = qp_rows.reshape(-1).astype(jnp.float32)            # (B,)
    inv_d = 1.0 / delta                                     # exact reciprocal
    lo = -sg * qp                                           # hoisted clip bounds
    hi = qp - 1.0
    return delta, inv_d, lo, hi


# ----------------------------------------------------------------------------
# Pallas kernel: the elementwise quantization hot path of base_q(...)
#   out = delta * clip(round(x * (1/delta)), lo, hi)     (per-batch scalars)
# ----------------------------------------------------------------------------
def _hmq_quant_kernel(delta_ref, inv_ref, lo_ref, hi_ref, x_ref, o_ref):
    b = pl.program_id(0)                    # batch row -> SMEM scalar index
    d = delta_ref[b]
    inv_d = inv_ref[b]
    lo = lo_ref[b]
    hi = hi_ref[b]
    x = x_ref[...].astype(jnp.float32)      # (1, R, 128) lane-dense tile
    q = jnp.clip(jnp.round(x * inv_d), lo, hi)
    o_ref[...] = (q * d).astype(o_ref.dtype)


def hmq_base_quantization(x2d, delta_rows, qp_rows, is_signed, *,
                          target_block_rows=2048):
    """Apply base_q on a (B, N) view with per-row delta / q_points."""
    B, N = x2d.shape
    delta, inv_d, lo, hi = _quant_params_rows(delta_rows, qp_rows, is_signed)

    # Repack each batch row into (rows, 128) lane-dense tiles.
    itemsize = jnp.dtype(x2d.dtype).itemsize
    sub = max(8, 32 // max(itemsize, 1))                 # 8 f32 / 16 bf16 / 32 i8
    rows = -(-N // _LANES)
    R = min(target_block_rows, -(-rows // sub) * sub)    # block rows, mult of sub
    rows_p = -(-rows // R) * R
    N_p = rows_p * _LANES
    if N_p != N:
        x2d = jnp.pad(x2d, ((0, 0), (0, N_p - N)))
    x3d = x2d.reshape(B, rows_p, _LANES)

    grid = (B, rows_p // R)
    out3d = pl.pallas_call(
        _hmq_quant_kernel,
        out_shape=jax.ShapeDtypeStruct((B, rows_p, _LANES), x2d.dtype),
        grid=grid,
        in_specs=[
            pl.BlockSpec(memory_space=pltpu.MemorySpace.SMEM),   # delta (B,)
            pl.BlockSpec(memory_space=pltpu.MemorySpace.SMEM),   # 1/delta (B,)
            pl.BlockSpec(memory_space=pltpu.MemorySpace.SMEM),   # clip lo (B,)
            pl.BlockSpec(memory_space=pltpu.MemorySpace.SMEM),   # clip hi (B,)
            pl.BlockSpec((1, R, _LANES), lambda i, j: (i, j, 0)),
        ],
        out_specs=pl.BlockSpec((1, R, _LANES), lambda i, j: (i, j, 0)),
        compiler_params=pltpu.CompilerParams(
            dimension_semantics=("parallel", "parallel"),
            vmem_limit_bytes=32 * 1024 * 1024,   # headroom on v5e/v6e, fits v7x
        ),
    )(delta, inv_d, lo, hi, x3d)

    out2d = out3d.reshape(B, N_p)
    if N_p != N:
        out2d = out2d[:, :N]
    return out2d


def _base_q_ref(x2d, delta_rows, qp_rows, is_signed):
    """Pure-jnp reference of base_q (same reciprocal-multiply formulation)."""
    delta, inv_d, lo, hi = _quant_params_rows(delta_rows, qp_rows, is_signed)
    xf = x2d.astype(jnp.float32)
    q = jnp.clip(jnp.round(xf * inv_d[:, None]), lo[:, None], hi[:, None])
    return (q * delta[:, None]).astype(x2d.dtype)


# ----------------------------------------------------------------------------
# The Quantization (HMQ) module: parameter setup + probability glue in JAX,
# quantization hot path in the Pallas kernel above.
# ----------------------------------------------------------------------------
class QuantizationHMQ:
    """Activation HMQ block (TensorType.ACTIVATION, statistics_update=False)."""

    def __init__(self, is_signed, bits_list, thresholds_shifts,
                 p=0.9, temperature=1.0, base_threshold=3.0, alpha=0.9, seed=0):
        self.alpha = alpha
        self.temperature = float(temperature)
        self.is_signed_tensor = jnp.array([float(is_signed)], jnp.float32)
        # update_bits_list(...)
        self.bits_vector = jnp.array(bits_list, jnp.float32)
        self.nb_shifts_points_div = jnp.power(2.0, self.bits_vector)
        # _init_quantization_params(...)
        self.mv_shifts = jnp.array(thresholds_shifts, jnp.float32)
        self.thresholds_shifts_points_div = jnp.power(2.0, self.mv_shifts)
        self.base_thresholds = jnp.array([float(base_threshold)], jnp.float32)
        # _init_search_matrix(p, n_bits_list, n_thresholds_options)
        rng = np.random.default_rng(seed)
        n_channels = 1
        sm = -rng.random((n_channels, len(bits_list), len(thresholds_shifts), 1))
        n = sm.size
        sm[0, 0, 0, 0] = np.log(p * n / (1.0 - p))
        self.search_matrix = jnp.asarray(sm, jnp.float32)

    # GumbelSoftmax(self.search_matrix, T, batch_size, noise_disable)
    def _gumbel_softmax(self, key, batch_size, noise_disable):
        pi = self.search_matrix
        logits = jnp.broadcast_to(pi[None], (batch_size,) + pi.shape)
        if not noise_disable:
            eps = 1e-6
            u = jax.random.uniform(key, logits.shape, minval=eps, maxval=1.0 - eps)
            logits = logits - jnp.log(-jnp.log(u))
        flat = logits.reshape(batch_size, -1) / self.temperature
        return jax.nn.softmax(flat, axis=-1).reshape(logits.shape)

    def __call__(self, x, *, training=False, key=None, use_pallas=True):
        # x: NCHW activation. statistics_update assumed False (no IIR update).
        max_threshold = jnp.power(
            2.0, jnp.ceil(jnp.log2(jnp.abs(self.base_thresholds))))      # (1,)
        B = x.shape[0]
        N = int(np.prod(x.shape[1:]))
        x2d = x.reshape(B, N)
        tspd = self.thresholds_shifts_points_div                          # (NT,)
        nbpd = self.nb_shifts_points_div                                  # (NB,)
        sg = self.is_signed_tensor                                        # (1,)

        if training and self.temperature > 0:
            # training branch: expected delta / q-points, param_shape = [B,1,1,1]
            p5 = self._gumbel_softmax(key, batch_size=B, noise_disable=False)
            max_scales = (max_threshold / tspd.reshape(1, -1)).reshape(1, 1, 1, -1, 1)
            nb_shifts = nbpd.reshape(1, 1, -1, 1, 1) * jnp.power(2.0, -sg)
            d5 = max_scales / nb_shifts * p5                              # (B,1,NB,NT,1)
            delta = d5.sum(-1).sum(-1).sum(-1).sum(-1)                    # (B,)
            p_t = p5.sum(4).sum(2).sum(1)                                 # (B, NT)
            thresholds = max_threshold / tspd.reshape(1, -1)              # (1, NT)
            t = (p_t * thresholds).sum(-1)                                # (B,)
            q_points = t / delta                                          # (B,)
            delta_rows = delta.reshape(B, 1)
            qp_rows = q_points.reshape(B, 1)
        else:
            # eval branch: hard argmax bit-width / threshold-shift selection
            p = self._gumbel_softmax(key, batch_size=1, noise_disable=True)[0]  # (C,NB,NT,1)
            bits_prob = p.sum(3).sum(2).sum(0)                                  # (NB,)
            bits_index = jnp.argmax(bits_prob)
            max_index = jnp.argmax(p[:, bits_index, :, 0], axis=-1)             # (C,)
            q_points = nbpd[bits_index] * jnp.power(2.0, -sg[0])                # scalar
            max_scales = max_threshold / tspd.reshape(1, -1)                    # (1, NT)
            delta = max_scales[jnp.arange(max_index.shape[0]), max_index] / q_points
            delta_rows = jnp.broadcast_to(delta.reshape(1, 1), (B, 1)).astype(jnp.float32)
            qp_rows = jnp.full((B, 1), q_points, jnp.float32)

        if use_pallas:
            out2d = hmq_base_quantization(x2d, delta_rows, qp_rows, sg)
        else:
            out2d = _base_q_ref(x2d, delta_rows, qp_rows, sg)
        return out2d.reshape(x.shape)


if __name__ == "__main__":
    key = jax.random.PRNGKey(0)
    kx, kg, kx2 = jax.random.split(key, 3)
    x = jax.random.normal(kx, (2, 4, 16, 16), dtype=jnp.float32)   # NCHW activation

    hmq = QuantizationHMQ(
        is_signed=True,
        bits_list=[8],                            # activation -> n_bits_list == [8]
        thresholds_shifts=[0, 1, 2, 3, 4, 5, 6, 7],
        p=0.9, temperature=1.0, base_threshold=3.0,
    )

    # eval / inference path
    y_eval = hmq(x, training=False, key=kg)
    y_eval_ref = hmq(x, training=False, key=kg, use_pallas=False)
    # training path (expected delta / q-points with Gumbel noise)
    y_train = hmq(x, training=True, key=kg)
    y_train_ref = hmq(x, training=True, key=kg, use_pallas=False)

    # a shape whose flattened size is not a multiple of 128 (exercises padding)
    x_odd = jax.random.normal(kx2, (2, 3, 10, 10), dtype=jnp.float32)
    y_odd = hmq(x_odd, training=False, key=kg)
    y_odd_ref = hmq(x_odd, training=False, key=kg, use_pallas=False)

    jax.block_until_ready((y_eval, y_train, y_odd))

    assert y_eval.shape == x.shape and y_train.shape == x.shape
    assert y_odd.shape == x_odd.shape
    np.testing.assert_allclose(np.asarray(y_eval), np.asarray(y_eval_ref),
                               rtol=1e-5, atol=1e-5)
    np.testing.assert_allclose(np.asarray(y_train), np.asarray(y_train_ref),
                               rtol=1e-5, atol=1e-5)
    np.testing.assert_allclose(np.asarray(y_odd), np.asarray(y_odd_ref),
                               rtol=1e-5, atol=1e-5)
    print("KERNEL_OK")
</pallas_src>

<mosaic_0001>
module attributes {stable_mosaic.version = 11 : i64} {
  func.func @_hmq_quant_kernel(%arg0: i32, %arg1: i32, %arg2: memref<2xf32, #tpu.memory_space<smem>>, %arg3: memref<2xf32, #tpu.memory_space<smem>>, %arg4: memref<2xf32, #tpu.memory_space<smem>>, %arg5: memref<2xf32, #tpu.memory_space<smem>>, %arg6: memref<1x8x128xf32, #tpu.memory_space<vmem>>, %arg7: memref<1x8x128xf32, #tpu.memory_space<vmem>>) attributes {dimension_semantics = [#tpu.dimension_semantics<parallel>, #tpu.dimension_semantics<parallel>], iteration_bounds = array<i64: 2, 1>, scalar_prefetch = 0 : i64, scratch_operands = 0 : i64, tpu.core_type = #tpu.core_type<tc>, window_params = [{transform_indices = @transform_0, window_bounds = array<i64: 2>}, {transform_indices = @transform_1, window_bounds = array<i64: 2>}, {transform_indices = @transform_2, window_bounds = array<i64: 2>}, {transform_indices = @transform_3, window_bounds = array<i64: 2>}, {transform_indices = @transform_4, window_bounds = array<i64: 1, 8, 128>}, {transform_indices = @transform_5, window_bounds = array<i64: 1, 8, 128>}]} {
    %0 = arith.index_cast %arg0 : i32 to index
    %1 = memref.load %arg2[%0] : memref<2xf32, #tpu.memory_space<smem>>
    %2 = arith.index_cast %arg0 : i32 to index
    %3 = memref.load %arg3[%2] : memref<2xf32, #tpu.memory_space<smem>>
    %4 = arith.index_cast %arg0 : i32 to index
    %5 = memref.load %arg4[%4] : memref<2xf32, #tpu.memory_space<smem>>
    %6 = arith.index_cast %arg0 : i32 to index
    %7 = memref.load %arg5[%6] : memref<2xf32, #tpu.memory_space<smem>>
    %c0 = arith.constant 0 : index
    %c0_0 = arith.constant 0 : index
    %c0_1 = arith.constant 0 : index
    %8 = vector.load %arg6[%c0, %c0_0, %c0_1] : memref<1x8x128xf32, #tpu.memory_space<vmem>>, vector<1x8x128xf32>
    %9 = vector.broadcast %3 : f32 to vector<1x8x128xf32>
    %10 = arith.mulf %8, %9 : vector<1x8x128xf32>
    %11 = math.roundeven %10 : vector<1x8x128xf32>
    %12 = vector.broadcast %5 : f32 to vector<1x8x128xf32>
    %13 = arith.maximumf %12, %11 : vector<1x8x128xf32>
    %14 = vector.broadcast %7 : f32 to vector<1x8x128xf32>
    %15 = arith.minimumf %14, %13 : vector<1x8x128xf32>
    %16 = vector.broadcast %1 : f32 to vector<1x8x128xf32>
    %17 = arith.mulf %15, %16 : vector<1x8x128xf32>
    %c0_2 = arith.constant 0 : index
    %c0_3 = arith.constant 0 : index
    %c0_4 = arith.constant 0 : index
    %18 = vector.load %arg7[%c0_2, %c0_3, %c0_4] : memref<1x8x128xf32, #tpu.memory_space<vmem>>, vector<1x8x128xf32>
    tpu.vector_store %arg7[%c0_2, %c0_3, %c0_4], %17 {strides = array<i32>} : memref<1x8x128xf32, #tpu.memory_space<vmem>>, vector<1x8x128xf32>,
    return
  }
  func.func @transform_0(%arg0: i32, %arg1: i32) -> i32 {
    %c0_i32 = arith.constant 0 : i32
    %c0_i32_0 = arith.constant 0 : i32
    return %c0_i32 : i32
  }
  func.func @transform_1(%arg0: i32, %arg1: i32) -> i32 {
    %c0_i32 = arith.constant 0 : i32
    %c0_i32_0 = arith.constant 0 : i32
    return %c0_i32 : i32
  }
  func.func @transform_2(%arg0: i32, %arg1: i32) -> i32 {
    %c0_i32 = arith.constant 0 : i32
    %c0_i32_0 = arith.constant 0 : i32
    return %c0_i32 : i32
  }
  func.func @transform_3(%arg0: i32, %arg1: i32) -> i32 {
    %c0_i32 = arith.constant 0 : i32
    %c0_i32_0 = arith.constant 0 : i32
    return %c0_i32 : i32
  }
  func.func @transform_4(%arg0: i32, %arg1: i32) -> (i32, i32, i32) {
    %c0_i32 = arith.constant 0 : i32
    %c0_i32_0 = arith.constant 0 : i32
    return %arg0, %arg1, %c0_i32 : i32, i32, i32
  }
  func.func @transform_5(%arg0: i32, %arg1: i32) -> (i32, i32, i32) {
    %c0_i32 = arith.constant 0 : i32
    %c0_i32_0 = arith.constant 0 : i32
    return %arg0, %arg1, %c0_i32 : i32, i32, i32
  }
}

</mosaic_0001>

<bundles_post_ra>
// kernel: tpu_custom_call.1
= control target key start
LH: loop header
LB: loop body
LE: loop exit
PB: predicated region body
PF: predicated region fallthrough
CT: control target
= control target key end

     0   :  { %s1020_s0 = inlined_call_operand.hbm [shape: f32[2], index: 0, kind: input, shape index: {}]   ;;  %s1021_s1 = inlined_call_operand.vmem [shape: f32[2], index: 1, kind: input, shape index: {}]   ;;  %s1022_s2 = inlined_call_operand.vmem [shape: f32[2], index: 2, kind: input, shape index: {}]   ;;  %s1023_s3 = inlined_call_operand.vmem [shape: f32[2], index: 3, kind: input, shape index: {}]   ;;  %s1024_s4 = inlined_call_operand.hbm [shape: f32[2,8,128], index: 4, kind: input, shape index: {}]   ;;  %s1025_s5 = inlined_call_operand.hbm [shape: f32[2,8,128], index: 5, kind: output, shape index: {}]  }
   0x1   :  { %1026 = sst [smem:[#allocation18_spill]] %s1020_s0 }
   0x2   :  { %1027 = sst [smem:[#allocation19_spill]] %s1021_s1 }
   0x3   :  { %10 = vsyncpa [#allocation5], 0 }
   0x4   :  { %11 = vsyncpa [#allocation6], 0 }
   0x5   :  { %12 = vsyncpa [#allocation9], 0 }
   0x6   :  { %13 = vsyncpa [#allocation3], 0 }
   0x7   :  { %15 = vsyncpa [#allocation3 + $0x1], 0 }
   0x8   :  { %16 = vsyncpa [#allocation4], 0 }
   0x9   :  { %18 = vsyncpa [#allocation4 + $0x1], 0  ;;  %s806_s18 = smov 0   ;;  %s808_s19 = smov 0  }
   0xa   :  { %s810_s20 = smov 0   ;;  %s812_s21 = smov 0  }
   0xb   :  { %s814_s22 = smov 0   ;;  %s816_s23 = smov 0  }
   0xc LB: > { %s214_s26 = sshll.u32 %s1022_s2, 4  ;;  %s460_s27 = sadd.s32 4294967295, %s768_s23   ;;  %s768_s23 = sphi %s816_s23, %s24_s23   ;;  %s764_s22 = sphi %s814_s22, %s1044_s22   ;;  %s760_s21 = sphi %s812_s21, %s1043_s21   ;;  %s756_s20 = sphi %s810_s20, %s1042_s20   ;;  %s752_s19 = sphi %s808_s19, %s1041_s19   ;;  %s748_s18 = sphi %s806_s18, %s1040_s18   ;;  %s215_s26 = int_to_ptr.vmem [resolvable:$true] %s214_s26 }
   0xd   : > { %p462_p0 = scmp.ge.s32.totalorder %s768_s23, 1  ;;  %p843_p1 = scmp.eq.s32.totalorder %s460_s27, 0 }
   0xe   : > { %p181_p2 = scmp.lt.s32.totalorder %s768_s23, 3  ;;  %s1030_s1 = sld [smem:[#allocation19_spill]] }
   0xf   : > { %s225_s11 = sshll.u32 %s1023_s3, 4  ;;  %s592_s12 = scalar_lea.vmem %s215_s26, 16  ;;  %s867_s11 = int_to_ptr.vmem [resolvable:$true] %s225_s11 }
  0x10   : > { %p848_p3 = pnand %p462_p0, %p181_p2  ;;  %p593_p7 = scmp.ne.s32.totalorder %s215_s26, %s592_s12 }
  0x11   : > { %p600_p11 = scmp.lt.s32.totalorder %s215_s26, %s215_s26  ;;  %p601_p12 = scmp.lt.s32.totalorder %s592_s12, %s592_s12 }
  0x12   : > { %p509_p5 = pneg %p848_p3 }
  0x13   : > { %p602_p13 = por %p601_p12, %p600_p11 }
  0x14   : > { %s203_s7 = sshll.u32 %s1030_s1, 4  ;;  %p860_p6 = pnand %p509_p5, %p843_p1  ;;  %s204_s7 = int_to_ptr.vmem [resolvable:$true] %s203_s7 }
  0x16   : > { %p594_p8 = pneg %p860_p6 }
  0x18   : > { %p595_p9 = pnand %p594_p8, %p593_p7 }
  0x1a   : > { %p596_p10 = pneg %p595_p9 }
  0x1c   : > { %p603_p0 = pnand %p602_p13, %p596_p10 }
  0x1e   : > { %606 = shalt.err (!%p603_p0)
}
  0x1f   : > { %s770_s13 = smov [#allocation8]   ;;  %s771_s14 = smov [#allocation2]  }
  0x20   : > { %518 = dma.vmem_to_smem (!%p860_p6), %s215_s26, 16, %s770_s13, [#allocation9]  }
  0x21   : > { %s1032_s0 = sld [smem:[#allocation18_spill]]  ;;  %s618_s17 = scalar_lea.vmem %s204_s7, 16 }
  0x22   : > { %p619_p2 = scmp.ne.s32.totalorder %s204_s7, %s618_s17  ;;  %p626_p9 = scmp.lt.s32.totalorder %s204_s7, %s204_s7 }
  0x23   : > { %p627_p10 = scmp.lt.s32.totalorder %s618_s17, %s618_s17 }
  0x24   : > { %p621_p5 = pnand %p619_p2, %p594_p8 }
  0x25   : > { %p628_p11 = por %p627_p10, %p626_p9 }
  0x26   : > { %p622_p7 = pneg %p621_p5 }
  0x27   : > { %512 = dma.hbm_to_smem (!%p860_p6), %s1032_s0, 16, %s771_s14, [#allocation5]  }
  0x28   : > { %p629_p12 = pnand %p628_p11, %p622_p7 }
  0x2a   : > { %632 = shalt.err (!%p629_p12)
}
  0x2b   : > { %s772_s24 = smov [#allocation7]   ;;  %s633_s25 = scalar_lea.vmem %s867_s11, 16 }
  0x2c   : > { %515 = dma.vmem_to_smem (!%p860_p6), %s204_s7, 16, %s772_s24, [#allocation6]  }
  0x2d   : > { %p634_p13 = scmp.ne.s32.totalorder %s867_s11, %s633_s25  ;;  %p641_p5 = scmp.lt.s32.totalorder %s867_s11, %s867_s11 }
  0x2e   : > { %p642_p4 = scmp.lt.s32.totalorder %s633_s25, %s633_s25 }
  0x2f   : > { %p636_p0 = pnand %p634_p13, %p594_p8 }
  0x30   : > { %p643_p9 = por %p642_p4, %p641_p5 }
  0x31   : > { %p637_p2 = pneg %p636_p0 }
  0x33   : > { %p644_p7 = pnand %p643_p9, %p637_p2 }
  0x35   : > { %647 = shalt.err (!%p644_p7)
}
  0x36   : > { %s773_s26 = smov [#allocation10]   ;;  %s461_s30 = sadd.s32 4294967294, %s768_s23  }
  0x37   : > { %521 = dma.vmem_to_smem (!%p860_p6), %s867_s11, 16, %s773_s26, [#allocation9]  }
  0x38   : > { %s36_s6 = sadd.s32 1, %s764_s22  ;;  %s129_s7 = sadd.s32 1, %s756_s20 }
  0x39   : > { %p38_p4 = scmp.ge.s32.totalorder %s36_s6, 2  ;;  %p136_p8 = scmp.ne.s32.totalorder %s756_s20, %s752_s19 }
  0x3a   : > { %p137_p10 = scmp.eq.s32.totalorder %s768_s23, 0  ;;  %p142_p12 = scmp.ne.s32.totalorder %s752_s19, %s748_s18 }
  0x3b   : > { %s1046_s6 = smov (%p38_p4, %s36_s6), 0  ;;  %p168_p6 = scmp.eq.s32.totalorder %s460_s27, 1 }
  0x3c   : > { %p904_p11 = por %p137_p10, %p136_p8  ;;  %s124_s9 = ssub.s32 %s764_s22, %s1046_s6 }
  0x3d   : > { %p127_p13 = scmp.eq.s32.totalorder %s124_s9, 0  ;;  %p916_p0 = por %p843_p1, %p142_p12 }
  0x3e   : > { %p920_p2 = por %p168_p6, %p136_p8  ;;  %p174_p5 = scmp.eq.s32.totalorder %s461_s30, 1 }
  0x3f   : > { %s925_s12 = scalar_select %p127_p13, %s756_s20, %s129_s7  }
  0x40   : > { %p927_p9 = por %p174_p5, %p142_p12  ;;  %p534_p7 = scmp.lt.s32.totalorder %s768_s23, 2 }
  0x41   : > { %s236_s14 = sand.u32 1, %s756_s20   ;;  %s469_s27 = sshll.u32 %s764_s22, 7 }
  0x42   : > { %s1036_s13 = scalar_select %p927_p9, 1, 0 }
  0x43   : > { %s468_s15 = sshll.u32 %s236_s14, 3  ;;  %s246_s24 = scalar_lea.hbm %s1024_s4, %s469_s27 }
  0x44   : > { %s240_s25 = scalar_lea.vmem [#allocation11], %s468_s15  ;;  %p939_p4 = pnand %p534_p7, %p904_p11 }
  0x45   : > { %s248_s26 = sshll.u32 %s240_s25, 4  ;;  %s237_s30 = scalar_lea.sflag [#allocation3], %s236_s14  ;;  %s249_s26 = int_to_ptr.vmem [resolvable:$true] %s248_s26 }
  0x46   : > { %p650_p8 = pneg %p939_p4  ;;  %s661_s7 = scalar_lea.vmem %s249_s26, 128 }
  0x47   : > { %p662_p10 = scmp.ne.s32.totalorder %s249_s26, %s661_s7  ;;  %s774_s0 = smov [#allocation11]  }
  0x48   : > { %s666_s1 = sshll.u32 %s774_s0, 4  ;;  %s667_s1 = int_to_ptr.vmem [resolvable:$false] %s666_s1 }
  0x49   : > { %p664_p12 = pnand %p662_p10, %p650_p8  ;;  %s668_s27 = scalar_lea.vmem %s667_s1, 256 }
  0x4a   : > { %p669_p13 = scmp.lt.s32.totalorder %s249_s26, %s667_s1  ;;  %p670_p5 = scmp.lt.s32.totalorder %s668_s27, %s661_s7 }
  0x4b   : > { %p665_p6 = pneg %p664_p12 }
  0x4c   : > { %p671_p9 = por %p670_p5, %p669_p13 }
  0x4e   : > { %p672_p11 = pnand %p671_p9, %p665_p6 }
  0x50   : > { %675 = shalt.err (!%p672_p11)
}
  0x51   : > { %525 = dma.hbm_to_vmem [thread:$0]  (!%p939_p4), %s246_s24, 128, %s249_s26, %s237_s30  }
  0x52   : > { %257 = sbr.rel (%p848_p3) target bundleno = 135 (0x87), region = 40 }
  0x57   : > { %727 = dma.done.wait (%p843_p1), [#allocation5], 16  }
  0x58   : > { %729 = vsyncadd (%p843_p1), [#allocation5], 4294967280 }
  0x59   : > { %731 = dma.done.wait (%p843_p1), [#allocation6], 16  }
  0x5a   : > { %733 = vsyncadd (%p843_p1), [#allocation6], 4294967280 }
  0x5b   : > { %735 = dma.done.wait (%p843_p1), [#allocation9], 32  }
  0x5c   : > { %737 = vsyncadd (%p843_p1), [#allocation9], 4294967264  ;;  %s962_s0 = sand.u32 1, %s752_s19  }
  0x5d   : > { %s475_s1 = sshll.u32 %s962_s0, 3  ;;  %s276_s29 = scalar_lea.sflag [#allocation3], %s962_s0 }
  0x5e   : > { %s279_s8 = scalar_lea.vmem [#allocation11], %s475_s1 }
  0x5f   : > { %739 = dma.done.wait (%p916_p0), %s276_s29, 128  }
  0x60   : > { %741 = vsyncadd (%p916_p0), %s276_s29, 4294967168 }
  0x61   : > { %284 = sfence }
  0x62   : > { %s308_s28 = sld [smem:[#allocation7 + %s760_s21]]  ;;  %v311_v0 = vld [vmem:[%s279_s8] sm:$0xff]  ;;  %s306_s10 = scalar_lea.vmem [#allocation12], %s475_s1 }
  0x63   : > { %s309_s14 = sld [smem:[#allocation8 + %s760_s21]]  ;;  %s337_s17 = sshll.u32 %s306_s10, 4  ;;  %s975_s17 = int_to_ptr.vmem [resolvable:$true] %s337_s17 }
  0x64   : > { %s310_s15 = sld [smem:[#allocation10 + %s760_s21]]  ;;  %s478_s24 = sshll.u32 %s760_s21, 7 }
  0x65   : > { %s307_s16 = sld [smem:[#allocation2 + %s760_s21]]  ;;  %s335_s9 = scalar_lea.hbm %s1025_s5, %s478_s24 }
  0x66   : > { %s323_s30 = scalar_lea.sflag [#allocation4], %s962_s0  ;;  %s676_s7 = scalar_lea.vmem %s975_s17, 128 }
  0x67   : > { %p677_p1 = scmp.ne.s32.totalorder %s975_s17, %s676_s7  ;;  %s775_s27 = smov [#allocation12]  }
  0x68   : > { %v312_v1 = vstv %s308_s28  ;;  %s680_s21 = sshll.u32 %s775_s27, 4  ;;  %s681_s21 = int_to_ptr.vmem [resolvable:$false] %s680_s21 }
  0x69   : > { %v313_v2 = vmul.f32 %v312_v1, %v311_v0  ;;  %v315_v9 = vstv %s309_s14  ;;  %p678_p3 = pnand %p677_p1, %p920_p2  ;;  %s682_s1 = scalar_lea.vmem %s681_s21, 256 }
  0x6a   : > { %v317_v11 = vstv %s310_s15  ;;  %p683_p9 = scmp.lt.s32.totalorder %s975_s17, %s681_s21  ;;  %p684_p7 = scmp.lt.s32.totalorder %s682_s1, %s676_s7 }
  0x6b   : > { %v483_v3 = vcvt.f32.s32 %v313_v2  ;;  %v481_v4 = vand.u32 2147483647, %v313_v2  ;;  %v486_v6 = vand.u32 2147483648, %v313_v2  ;;  %v319_v13 = vstv %s307_s16  ;;  %p679_p0 = pneg %p678_p3 }
  0x6c   : > { %p685_p4 = por %p684_p7, %p683_p9 }
  0x6d   : > { %v484_v5 = vcvt.s32.f32 %v483_v3  ;;  %vm482_vm0 = vcmp.lt.f32.partialorder %v481_v4, 8388608.0 }
  0x6e   : > { %p686_p8 = pnand %p685_p4, %p679_p0 }
  0x6f   : > { %v485_v7 = vand.u32 2147483647, %v484_v5 }
  0x71   : > { %v487_v8 = vor.u32 %v486_v6, %v485_v7 }
  0x73   : > { %v488_v10 = vsel %vm482_vm0, %v487_v8, %v313_v2 }
  0x74   : > { %v316_v12 = vmax.f32 %v315_v9, %v488_v10 }
  0x76   : > { %v318_v14 = vmin.f32 %v317_v11, %v316_v12 }
  0x78   : > { %v320_v15 = vmul.f32 %v319_v13, %v318_v14 }
  0x7a   : > { %321 = vst [vmem:[%s306_s10] sm:$0xff] %v320_v15 }
  0x7b   : > { %689 = shalt.err (!%p686_p8)
}
  0x7c   : > { %s690_s29 = scalar_lea.hbm %s335_s9, 128  ;;  %s694_s28 = scalar_lea.hbm %s1025_s5, 256 }
  0x7d   : > { %p691_p10 = scmp.ne.s32.totalorder %s335_s9, %s690_s29  ;;  %p695_p13 = scmp.lt.s32.totalorder %s335_s9, %s1025_s5 }
  0x7e   : > { %p696_p5 = scmp.lt.s32.totalorder %s694_s28, %s690_s29 }
  0x7f   : > { %p692_p12 = pnand %p691_p10, %p920_p2 }
  0x80   : > { %p697_p11 = por %p696_p5, %p695_p13 }
  0x81   : > { %p693_p6 = pneg %p692_p12 }
  0x83   : > { %p698_p1 = pnand %p697_p11, %p693_p6 }
  0x85   : > { %701 = shalt.err (!%p698_p1)
}
  0x86   : > { %507 = dma.vmem_to_hbm [thread:$0]  (%p920_p2), %s975_s17, 128, %s335_s9, %s323_s30  }
  0x87 PF: > { %s349_s16 = sand.u32 1, %s748_s18   ;;  %p1038_p3 = scmp.ne.s32.totalorder %s1036_s13, 0 }
  0x88   : > { %p1039_p0 = scmp.ge.s32.totalorder %s768_s23, 2  ;;  %s350_s10 = scalar_lea.sflag [#allocation4], %s349_s16 }
  0x8a   : > { %p527_p9 = pnand %p1039_p0, %p1038_p3 }
  0x8c   : > { %p528_p7 = pneg %p527_p9 }
  0x8e   : > { %743 = dma.done.wait (%p528_p7), %s350_s10, 128  }
  0x8f   : > { %745 = vsyncadd (%p528_p7), %s350_s10, 4294967168  ;;  %s24_s23 = sadd.s32 1, %s768_s23   ;;  %s1040_s18 = smov %s752_s19 }
  0x90   : > { %p21_p4 = scmp.ge.s32.totalorder %s24_s23, 4   ;;  %s1041_s19 = smov %s756_s20 }
  0x91   : > { %s1042_s20 = smov %s925_s12  ;;  %s1043_s21 = smov %s764_s22 }
  0x92   : > { %s1044_s22 = smov %s1046_s6  ;;  %23 = sbr.rel (!%p21_p4) target bundleno = 12 (0xc), region = 103 }
  0x97   :  { %355 = vsyncpa [#allocation3], 1 }
  0x98   :  { %357 = vsyncpa [#allocation3 + $0x1], 1 }
  0x99   :  { %358 = vsyncpa [#allocation4], 1 }
  0x9a   :  { %360 = vsyncpa [#allocation4 + $0x1], 1 }
  0x9b   :  { %361 = vsyncpa [#allocation5], 1 }
  0x9c   :  { %363 = vsyncpa [#allocation5 + $0x1], 1 }
  0x9d   :  { %364 = vsyncpa [#allocation6], 1 }
  0x9e   :  { %366 = vsyncpa [#allocation6 + $0x1], 1 }
  0x9f   :  { %367 = vsyncpa [#allocation9], 1 }

</bundles_post_ra>
